<compile_context>
chip_gen: v5e
topology: v5e:2x2
jax: 0.10.0
libtpu: 0.0.40
codegen_flags: <defaults>
</compile_context>

<pallas_src>
import jax
import jax.numpy as jnp
from jax.experimental import pallas as pl
from jax.experimental.pallas import tpu as pltpu

H = 32            # hidden width of the MLP:  mlp_layers = [1, H, H, 1]
MAX_NBLK = 16384  # max elements per grid step (lane axis); multiple of 256


def value_layer_kernel(x_ref, w1_ref, b1_ref, w2t_ref, b2_ref, w3_ref, b3_ref, o_ref):
    # x:  (1, Nblk)            w1, b1, b2, w3: (H, 1)      w2t: (H, H)    b3: (1, 1)
    x = x_ref[...]                                                   # (1, Nblk)

    # Layer 0: Linear(1, H) + ReLU  -> outer product via broadcasting (VPU only)
    h = jnp.maximum(w1_ref[...] * x + b1_ref[...], 0.0)             # (H, Nblk)

    # Layer 1: Linear(H, H) + ReLU  -> MXU matmul with lane-dense (H, Nblk) output
    g = jnp.maximum(
        jnp.dot(w2t_ref[...], h, preferred_element_type=jnp.float32) + b2_ref[...],
        0.0,
    )                                                                # (H, Nblk)

    # Layer 2: Linear(H, 1)  -> VPU multiply + sublane reduce (XLU slot); avoids
    # an MXU matmul with output width 1 and keeps the final store lane-dense.
    o_ref[...] = jnp.sum(w3_ref[...] * g, axis=0, keepdims=True) + b3_ref[...]


def init_params(key, hidden=H):
    """Deterministic PyTorch-Linear-style init: U(-1/sqrt(fan_in), 1/sqrt(fan_in)).

    Stored in the kernel-friendly layout:
      w1, b1, b2, w3: (H, 1) columns;  w2t: (H, H) in torch (out, in) order;  b3: (1, 1).
    """
    ks = jax.random.split(key, 6)

    def unif(k, shape, fan_in):
        bound = 1.0 / (fan_in ** 0.5)
        return jax.random.uniform(k, shape, jnp.float32, -bound, bound)

    w1 = unif(ks[0], (hidden, 1), 1)              # Linear(1, H) weight (out, in)
    b1 = unif(ks[1], (hidden, 1), 1)
    w2t = unif(ks[2], (hidden, hidden), hidden)   # Linear(H, H) weight (out, in)
    b2 = unif(ks[3], (hidden, 1), hidden)
    w3 = unif(ks[4], (hidden, 1), hidden)         # Linear(H, 1) weight, stored (in, 1)
    b3 = unif(ks[5], (1, 1), hidden)
    return (w1, b1, w2t, b2, w3, b3)


@jax.jit
def value_layer_forward(x, params):
    w1, b1, w2t, b2, w3, b3 = params
    h = w2t.shape[0]
    orig_shape = x.shape

    flat = x.reshape(-1).astype(jnp.float32)
    n = flat.shape[0]

    # Lane-dense block: multiple of 256 (fills v6e/v7x MXU lane width).
    # For N=2000 this gives Nblk = 2048 and a single grid step.
    nblk = min(max(((n + 255) // 256) * 256, 256), MAX_NBLK)
    n_pad = ((n + nblk - 1) // nblk) * nblk
    xin = jnp.pad(flat, (0, n_pad - n)).reshape(1, n_pad)   # lane-dense (1, N)

    cost = pl.CostEstimate(
        flops=2 * n_pad * h * (h + 2),
        transcendentals=0,
        bytes_accessed=4 * (2 * n_pad + h * h + 5 * h + 1),
    )

    out = pl.pallas_call(
        value_layer_kernel,
        out_shape=jax.ShapeDtypeStruct((1, n_pad), jnp.float32),
        grid=(n_pad // nblk,),
        in_specs=[
            pl.BlockSpec((1, nblk), lambda i: (0, i)),   # x tile (lane-dense)
            pl.BlockSpec((h, 1), lambda i: (0, 0)),      # w1  (H, 1)
            pl.BlockSpec((h, 1), lambda i: (0, 0)),      # b1  (H, 1)
            pl.BlockSpec((h, h), lambda i: (0, 0)),      # w2ᵀ (H, H)
            pl.BlockSpec((h, 1), lambda i: (0, 0)),      # b2  (H, 1)
            pl.BlockSpec((h, 1), lambda i: (0, 0)),      # w3  (H, 1)
            pl.BlockSpec((1, 1), lambda i: (0, 0)),      # b3  (1, 1)
        ],
        out_specs=pl.BlockSpec((1, nblk), lambda i: (0, i)),
        compiler_params=pltpu.CompilerParams(
            dimension_semantics=("parallel",),   # megacore split only matters at large N
        ),
        cost_estimate=cost,
    )(xin, w1, b1, w2t, b2, w3, b3)

    out = out[0, :n].reshape(orig_shape)
    # torch .squeeze(): drop all size-1 dims (the [None, ..., None] dims + any in x)
    return jnp.squeeze(out)


def value_layer_reference(x, params):
    """Pure-JAX reference reproducing the PyTorch forward exactly."""
    w1, b1, w2t, b2, w3, b3 = params
    y = x.astype(jnp.float32)[None, ..., None]              # x[None, ..., None]
    y = jnp.maximum(y @ w1.T + b1[:, 0], 0.0)                # Linear(1, H) + ReLU
    y = jnp.maximum(y @ w2t.T + b2[:, 0], 0.0)               # Linear(H, H) + ReLU
    y = y @ w3 + b3[0]                                       # Linear(H, 1)
    return jnp.squeeze(y)


if __name__ == "__main__":
    key = jax.random.PRNGKey(0)
    k_param, k_x = jax.random.split(key)

    params = init_params(k_param)

    # Timestamps like the module's own usage: shape (1, 2000), values in [-1, 1]
    x = jax.random.uniform(k_x, (1, 2000), jnp.float32, -1.0, 1.0)

    out = value_layer_forward(x, params)
    out = jax.block_until_ready(out)

    ref = value_layer_reference(x, params)
    assert out.shape == ref.shape, (out.shape, ref.shape)
    assert jnp.allclose(out, ref, atol=1e-5, rtol=1e-5), float(
        jnp.max(jnp.abs(out - ref))
    )

    print("KERNEL_OK")
</pallas_src>

<mosaic_0001>
module attributes {stable_mosaic.version = 11 : i64} {
  func.func @value_layer_kernel(%arg0: i32, %arg1: memref<1x2048xf32, #tpu.memory_space<vmem>>, %arg2: memref<32x1xf32, #tpu.memory_space<vmem>>, %arg3: memref<32x1xf32, #tpu.memory_space<vmem>>, %arg4: memref<32x32xf32, #tpu.memory_space<vmem>>, %arg5: memref<32x1xf32, #tpu.memory_space<vmem>>, %arg6: memref<32x1xf32, #tpu.memory_space<vmem>>, %arg7: memref<1x1xf32, #tpu.memory_space<vmem>>, %arg8: memref<1x2048xf32, #tpu.memory_space<vmem>>) attributes {dimension_semantics = [#tpu.dimension_semantics<parallel>], iteration_bounds = array<i64: 1>, scalar_prefetch = 0 : i64, scratch_operands = 0 : i64, tpu.core_type = #tpu.core_type<tc>, window_params = [{transform_indices = @transform_0, window_bounds = array<i64: 1, 2048>}, {pipeline_mode = #tpu.pipeline_mode<synchronous>, transform_indices = @transform_1, window_bounds = array<i64: 32, 1>}, {pipeline_mode = #tpu.pipeline_mode<synchronous>, transform_indices = @transform_2, window_bounds = array<i64: 32, 1>}, {pipeline_mode = #tpu.pipeline_mode<synchronous>, transform_indices = @transform_3, window_bounds = array<i64: 32, 32>}, {pipeline_mode = #tpu.pipeline_mode<synchronous>, transform_indices = @transform_4, window_bounds = array<i64: 32, 1>}, {pipeline_mode = #tpu.pipeline_mode<synchronous>, transform_indices = @transform_5, window_bounds = array<i64: 32, 1>}, {pipeline_mode = #tpu.pipeline_mode<synchronous>, transform_indices = @transform_6, window_bounds = array<i64: 1, 1>}, {transform_indices = @transform_7, window_bounds = array<i64: 1, 2048>}]} {
    %c0 = arith.constant 0 : index
    %c0_0 = arith.constant 0 : index
    %0 = vector.load %arg1[%c0, %c0_0] : memref<1x2048xf32, #tpu.memory_space<vmem>>, vector<1x2048xf32>
    %c0_1 = arith.constant 0 : index
    %c0_2 = arith.constant 0 : index
    %1 = vector.load %arg2[%c0_1, %c0_2] : memref<32x1xf32, #tpu.memory_space<vmem>>, vector<32x1xf32>
    %2 = vector.broadcast %1 : vector<32x1xf32> to vector<32x2048xf32>
    %3 = vector.broadcast %0 : vector<1x2048xf32> to vector<32x2048xf32>
    %4 = arith.mulf %2, %3 : vector<32x2048xf32>
    %c0_3 = arith.constant 0 : index
    %c0_4 = arith.constant 0 : index
    %5 = vector.load %arg3[%c0_3, %c0_4] : memref<32x1xf32, #tpu.memory_space<vmem>>, vector<32x1xf32>
    %6 = vector.broadcast %5 : vector<32x1xf32> to vector<32x2048xf32>
    %7 = arith.addf %4, %6 : vector<32x2048xf32>
    %cst = arith.constant 0.000000e+00 : f32
    %8 = vector.broadcast %cst : f32 to vector<32x2048xf32>
    %9 = arith.maximumf %7, %8 : vector<32x2048xf32>
    %c0_5 = arith.constant 0 : index
    %c0_6 = arith.constant 0 : index
    %10 = vector.load %arg4[%c0_5, %c0_6] : memref<32x32xf32, #tpu.memory_space<vmem>>, vector<32x32xf32>
    %cst_7 = arith.constant dense<0.000000e+00> : vector<32x2048xf32>
    %11 = tpu.matmul %10, %9, %cst_7 {dimension_numbers = #tpu.dot_dimension_numbers<[1], [0], [0], [1], [0, 0, 1, 1], [], []>} : vector<32x32xf32>, vector<32x2048xf32>, vector<32x2048xf32> -> vector<32x2048xf32>
    %c0_8 = arith.constant 0 : index
    %c0_9 = arith.constant 0 : index
    %12 = vector.load %arg5[%c0_8, %c0_9] : memref<32x1xf32, #tpu.memory_space<vmem>>, vector<32x1xf32>
    %13 = vector.broadcast %12 : vector<32x1xf32> to vector<32x2048xf32>
    %14 = arith.addf %11, %13 : vector<32x2048xf32>
    %cst_10 = arith.constant 0.000000e+00 : f32
    %15 = vector.broadcast %cst_10 : f32 to vector<32x2048xf32>
    %16 = arith.maximumf %14, %15 : vector<32x2048xf32>
    %c0_11 = arith.constant 0 : index
    %c0_12 = arith.constant 0 : index
    %17 = vector.load %arg6[%c0_11, %c0_12] : memref<32x1xf32, #tpu.memory_space<vmem>>, vector<32x1xf32>
    %18 = vector.broadcast %17 : vector<32x1xf32> to vector<32x2048xf32>
    %19 = arith.mulf %18, %16 : vector<32x2048xf32>
    %cst_13 = arith.constant dense<0.000000e+00> : vector<2048xf32>
    %20 = vector.multi_reduction <add>, %19, %cst_13 [0] : vector<32x2048xf32> to vector<2048xf32>
    %21 = vector.shape_cast %20 : vector<2048xf32> to vector<1x2048xf32>
    %c0_14 = arith.constant 0 : index
    %c0_15 = arith.constant 0 : index
    %22 = vector.load %arg7[%c0_14, %c0_15] : memref<1x1xf32, #tpu.memory_space<vmem>>, vector<1x1xf32>
    %23 = vector.broadcast %22 : vector<1x1xf32> to vector<1x2048xf32>
    %24 = arith.addf %21, %23 : vector<1x2048xf32>
    %c0_16 = arith.constant 0 : index
    %c0_17 = arith.constant 0 : index
    %25 = vector.load %arg8[%c0_16, %c0_17] : memref<1x2048xf32, #tpu.memory_space<vmem>>, vector<1x2048xf32>
    tpu.vector_store %arg8[%c0_16, %c0_17], %24 {strides = array<i32>} : memref<1x2048xf32, #tpu.memory_space<vmem>>, vector<1x2048xf32>,
    return
  }
  func.func @transform_0(%arg0: i32) -> (i32, i32) {
    %c0_i32 = arith.constant 0 : i32
    %c0_i32_0 = arith.constant 0 : i32
    return %c0_i32, %arg0 : i32, i32
  }
  func.func @transform_1(%arg0: i32) -> (i32, i32) {
    %c0_i32 = arith.constant 0 : i32
    %c0_i32_0 = arith.constant 0 : i32
    %c0_i32_1 = arith.constant 0 : i32
    return %c0_i32, %c0_i32_0 : i32, i32
  }
  func.func @transform_2(%arg0: i32) -> (i32, i32) {
    %c0_i32 = arith.constant 0 : i32
    %c0_i32_0 = arith.constant 0 : i32
    %c0_i32_1 = arith.constant 0 : i32
    return %c0_i32, %c0_i32_0 : i32, i32
  }
  func.func @transform_3(%arg0: i32) -> (i32, i32) {
    %c0_i32 = arith.constant 0 : i32
    %c0_i32_0 = arith.constant 0 : i32
    %c0_i32_1 = arith.constant 0 : i32
    return %c0_i32, %c0_i32_0 : i32, i32
  }
  func.func @transform_4(%arg0: i32) -> (i32, i32) {
    %c0_i32 = arith.constant 0 : i32
    %c0_i32_0 = arith.constant 0 : i32
    %c0_i32_1 = arith.constant 0 : i32
    return %c0_i32, %c0_i32_0 : i32, i32
  }
  func.func @transform_5(%arg0: i32) -> (i32, i32) {
    %c0_i32 = arith.constant 0 : i32
    %c0_i32_0 = arith.constant 0 : i32
    %c0_i32_1 = arith.constant 0 : i32
    return %c0_i32, %c0_i32_0 : i32, i32
  }
  func.func @transform_6(%arg0: i32) -> (i32, i32) {
    %c0_i32 = arith.constant 0 : i32
    %c0_i32_0 = arith.constant 0 : i32
    %c0_i32_1 = arith.constant 0 : i32
    return %c0_i32, %c0_i32_0 : i32, i32
  }
  func.func @transform_7(%arg0: i32) -> (i32, i32) {
    %c0_i32 = arith.constant 0 : i32
    %c0_i32_0 = arith.constant 0 : i32
    return %c0_i32, %arg0 : i32, i32
  }
}

</mosaic_0001>

<bundles_post_ra>
// kernel: value_layer_forward.1
= control target key start
LH: loop header
LB: loop body
LE: loop exit
PB: predicated region body
PF: predicated region fallthrough
CT: control target
= control target key end

     0   :  { %s1974_s0 = inlined_call_operand.vmem [shape: f32[1,2048], index: 0, kind: input, shape index: {}]   ;;  %s1975_s1 = inlined_call_operand.vmem [shape: f32[32,1], index: 1, kind: input, shape index: {}]   ;;  %s1976_s2 = inlined_call_operand.vmem [shape: f32[32,1], index: 2, kind: input, shape index: {}]   ;;  %s1977_s3 = inlined_call_operand.vmem [shape: f32[32,32], index: 3, kind: input, shape index: {}]   ;;  %s1978_s4 = inlined_call_operand.vmem [shape: f32[32,1], index: 4, kind: input, shape index: {}]   ;;  %s1979_s5 = inlined_call_operand.vmem [shape: f32[32,1], index: 5, kind: input, shape index: {}]   ;;  %s1980_s6 = inlined_call_operand.<no memory space> [shape: f32[1,1], index: 6, kind: input, shape index: {}]   ;;  %s1981_s7 = inlined_call_operand.hbm [shape: f32[1,2048], index: 7, kind: output, shape index: {}]  }
   0x1   :  { %v12_v0 = vstv %s1980_s6 }
   0x2   :  { %13 = vst [vmem:[#allocation2] sm:$0x1] %v12_v0 }
   0x3   :  { %v155_v1 = vld [vmem:[%s1976_s2 + $0x10] sm:$0xff]  ;;  %v156_v2 = vld [vmem:[%s1976_s2 + $0x18] sm:$0xff]  ;;  %v1295_v4 = vmov 0  }
   0x4   :  { %v34_v3 = vld [vmem:[%s1975_s1 + $0x18] sm:$0xff]  ;;  %1268 = vset.pattern.permute.xlu2 %v1295_v4  ;;  %1267 = vset.pattern.permute.xlu1 %v1295_v4 }
   0x5   :  { %1266 = vset.pattern.permute.xlu0 %v1295_v4  ;;  %169 = vperm.xlu2 %1268, %v155_v1  }
   0x6   :  { %174 = vperm.xlu1 %1267, %v156_v2   ;;  %52 = vperm.xlu0 %1266, %v34_v3  }
   0x7   :  { %14 = vsyncpa [#allocation4], 0  ;;  %v31_v5 = vld [vmem:[%s1975_s1] sm:$0xff]  ;;  %v33_v6 = vld [vmem:[%s1975_s1 + $0x10] sm:$0xff]  ;;  %vm333_vm0 = vcmask 261120   ;;  %vm1161_vm1 = vcmask 1042434  }
   0x8   :  { %v32_v7 = vld [vmem:[%s1975_s1 + $0x8] sm:$0xff]  ;;  %v309_v8 = vld [vmem:[%s1978_s4] sm:$0xff]  ;;  %v312_v11 = vld [vmem:[%s1978_s4 + $0x18] sm:$0xff]  ;;  %vm1159_vm2 = vcmask 1040384   ;;  %vm1163_vm3 = vcmask 1041408   ;;  %vm1165_vm4 = vcmask 1044484  }
   0x9   :  { %v154_v9 = vld [vmem:[%s1976_s2 + $0x8] sm:$0xff]  ;;  %v153_v10 = vld [vmem:[%s1976_s2] sm:$0xff]  ;;  %v311_v13 = vld [vmem:[%s1978_s4 + $0x10] sm:$0xff]  ;;  %vm1167_vm5 = vcmask 1046534   ;;  %vm1169_vm6 = vcmask 1045508   ;;  %vm1171_vm7 = vcmask 1043456  }
   0xa   :  { %v310_v12 = vld [vmem:[%s1978_s4 + $0x8] sm:$0xff]  ;;  %v876_v14 = vld [vmem:[%s1979_s5 + $0x10] sm:$0xff]  ;;  %v874_v15 = vld [vmem:[%s1979_s5] sm:$0xff]  ;;  %s1191_s20 = sshll.u32 %s1981_s7, 4  ;;  %s1192_s20 = int_to_ptr.hbm [resolvable:$true] %s1191_s20 }
   0xb   :  { %v875_v16 = vld [vmem:[%s1979_s5 + $0x8] sm:$0xff]  ;;  %v877_v17 = vld [vmem:[%s1979_s5 + $0x18] sm:$0xff]  ;;  %v1106_v18 = vld [vmem:[#allocation2] sm:$0x1] }
   0xc   :  { %v29_v19 = vld [vmem:[%s1974_s0] sm:$0xff]  ;;  %v1417_v35 = vld [vmem:[%s1974_s0 + $0x8] sm:$0xff] }
   0xd   :  { %37 = vperm.xlu2 %1268, %v31_v5   ;;  %v57_v21 = vperm.slane %v29_v19, 0  ;;  %v1393_v22 = vperm.slane %v29_v19, 1  ;;  %v1395_v23 = vperm.slane %v29_v19, 2  ;;  %v1397_v24 = vperm.slane %v29_v19, 3 }
   0xe   :  { %47 = vperm.xlu0 %1266, %v33_v6   ;;  %42 = vperm.xlu1 %1267, %v32_v7   ;;  %v1419_v36 = vperm.slane %v29_v19, 4  ;;  %v1421_v37 = vperm.slane %v29_v19, 5  ;;  %v1423_v38 = vperm.slane %v29_v19, 6  ;;  %v1430_v46 = vperm.slane %v29_v19, 7 }
   0xf   :  { %v1433_v47 = vperm.slane %v1417_v35, 0  ;;  %v1440_v50 = vperm.slane %v1417_v35, 1  ;;  %v1443_v51 = vperm.slane %v1417_v35, 2  ;;  %v1460_v57 = vperm.slane %v1417_v35, 3 }
  0x15   :  { %315 = vperm.xlu2 %1268, %v309_v8  }
  0x16   :  { %164 = vperm.xlu0 %1266, %v154_v9   ;;  %159 = vperm.xlu1 %1267, %v153_v10  }
  0x1d   :  { %330 = vperm.xlu2 %1268, %v312_v11  }
  0x1e   :  { %320 = vperm.xlu0 %1266, %v310_v12   ;;  %325 = vperm.xlu1 %1267, %v311_v13  }
  0x25   :  { %890 = vperm.xlu2 %1268, %v876_v14  }
  0x26   :  { %880 = vperm.xlu0 %1266, %v874_v15   ;;  %885 = vperm.xlu1 %1267, %v875_v16  }
  0x2e   :  { %895 = vperm.xlu0 %1266, %v877_v17   ;;  %1109 = vperm.xlu1 %1267, %v1106_v18  }
  0x5f   :  { %v1391_v20 = vpop.permute.xlu2 %169 }
  0x67   :  { %v1425_v39 = vpop.permute.xlu2 %37 }
  0x68   :  { %v89_v44 = vmul.f32 %v57_v21, %v1425_v39  ;;  %v90_v45 = vmul.f32 %v1393_v22, %v1425_v39  ;;  %v91_v48 = vmul.f32 %v1395_v23, %v1425_v39  ;;  %v92_v49 = vmul.f32 %v1397_v24, %v1425_v39 }
  0x69   :  { %v1453_v55 = vmul.f32 %v1419_v36, %v1425_v39  ;;  %v1457_v56 = vmul.f32 %v1421_v37, %v1425_v39  ;;  %v1477_v1 = vmul.f32 %v1423_v38, %v1425_v39  ;;  %v1488_v7 = vmul.f32 %v1430_v46, %v1425_v39 }
  0x6a   :  { %v1492_v8 = vmul.f32 %v1433_v47, %v1425_v39  ;;  %v1496_v9 = vmul.f32 %v1440_v50, %v1425_v39 }
  0x78   :  { %v1399_v25 = vpop.permute.xlu1 %174  ;;  %v1401_v26 = vpop.permute.xlu0 %52 }
  0x79   :  { %v137_v27 = vmul.f32 %v57_v21, %v1401_v26  ;;  %v138_v28 = vmul.f32 %v1393_v22, %v1401_v26  ;;  %v139_v29 = vmul.f32 %v1395_v23, %v1401_v26  ;;  %v140_v30 = vmul.f32 %v1397_v24, %v1401_v26 }
  0x7a   :  { %v141_v54 = vmul.f32 %v1419_v36, %v1401_v26  ;;  %v142_v62 = vmul.f32 %v1421_v37, %v1401_v26  ;;  %v143_v63 = vmul.f32 %v1423_v38, %v1401_v26  ;;  %v144_v0 = vmul.f32 %v1430_v46, %v1401_v26 }
  0x7b   :  { %v225_v31 = vadd.f32 %v1399_v25, %v137_v27  ;;  %v226_v32 = vadd.f32 %v1399_v25, %v138_v28  ;;  %v227_v33 = vadd.f32 %v1399_v25, %v139_v29  ;;  %v228_v34 = vadd.f32 %v1399_v25, %v140_v30 }
  0x7c   :  { %v1484_v6 = vadd.f32 %v1399_v25, %v141_v54  ;;  %v1500_v15 = vadd.f32 %v1399_v25, %v142_v62  ;;  %v1503_v16 = vadd.f32 %v1399_v25, %v143_v63  ;;  %v1506_v17 = vadd.f32 %v1399_v25, %v144_v0 }
  0x7d   :  { %v289_v40 = vmax.f32 %v225_v31, 0.0  ;;  %v290_v41 = vmax.f32 %v226_v32, 0.0  ;;  %v291_v42 = vmax.f32 %v227_v33, 0.0  ;;  %v292_v43 = vmax.f32 %v228_v34, 0.0 }
  0x7e   :  { %v293_v29 = vmax.f32 %v1484_v6, 0.0  ;;  %v145_v62 = vmul.f32 %v1433_v47, %v1401_v26  ;;  %v147_v63 = vmul.f32 %v1443_v51, %v1401_v26  ;;  %v295_v6 = vmax.f32 %v1503_v16, 0.0 }
  0x7f   :  { %358 = vmatpush.msra.mxu0 %v289_v40  ;;  %387 = vmatpush.msra.mxu1 %v290_v41  ;;  %v148_v16 = vmul.f32 %v1460_v57, %v1401_v26 }
  0x80   :  { %416 = vmatpush.msra.mxu2 %v291_v42  ;;  %445 = vmatpush.msra.mxu3 %v292_v43  ;;  %v1445_v52 = vpop.permute.xlu0 %47  ;;  %v1447_v53 = vpop.permute.xlu1 %42 }
  0x81   :  { %v121_v58 = vmul.f32 %v57_v21, %v1445_v52  ;;  %v122_v59 = vmul.f32 %v1393_v22, %v1445_v52  ;;  %v123_v60 = vmul.f32 %v1395_v23, %v1445_v52  ;;  %v124_v61 = vmul.f32 %v1397_v24, %v1445_v52 }
  0x82   :  { %v105_v14 = vmul.f32 %v57_v21, %v1447_v53  ;;  %v106_v18 = vmul.f32 %v1393_v22, %v1447_v53  ;;  %v107_v19 = vmul.f32 %v1395_v23, %v1447_v53  ;;  %v108_v21 = vmul.f32 %v1397_v24, %v1447_v53 }
  0x83   :  { %v209_v2 = vadd.f32 %v1391_v20, %v121_v58  ;;  %v210_v3 = vadd.f32 %v1391_v20, %v122_v59  ;;  %v211_v4 = vadd.f32 %v1391_v20, %v123_v60  ;;  %v212_v5 = vadd.f32 %v1391_v20, %v124_v61 }
  0x84   :  { %v125_v30 = vmul.f32 %v1419_v36, %v1445_v52  ;;  %v126_v22 = vmul.f32 %v1421_v37, %v1445_v52  ;;  %v127_v23 = vmul.f32 %v1423_v38, %v1445_v52  ;;  %v294_v60 = vmax.f32 %v1500_v15, 0.0 }
  0x85   :  { %v273_v10 = vmax.f32 %v209_v2, 0.0  ;;  %v274_v11 = vmax.f32 %v210_v3, 0.0  ;;  %v275_v12 = vmax.f32 %v211_v4, 0.0  ;;  %v276_v13 = vmax.f32 %v212_v5, 0.0  ;;  %v1546_v3 = vld [vmem:[%s1977_s3] sm:$0xff] }
  0x86   :  { %v128_v61 = vmul.f32 %v1430_v46, %v1445_v52  ;;  %v214_v4 = vadd.f32 %v1391_v20, %v126_v22  ;;  %v215_v5 = vadd.f32 %v1391_v20, %v127_v23  ;;  %v112_v15 = vmul.f32 %v1430_v46, %v1447_v53 }
  0x87   :  { %359 = vmatpush.msra.mxu0 %v273_v10  ;;  %388 = vmatpush.msra.mxu1 %v274_v11  ;;  %v109_v10 = vmul.f32 %v1419_v36, %v1447_v53  ;;  %v110_v11 = vmul.f32 %v1421_v37, %v1447_v53 }
  0x88   :  { %417 = vmatpush.msra.mxu2 %v275_v12  ;;  %446 = vmatpush.msra.mxu3 %v276_v13  ;;  %v1514_v27 = vpop.permute.xlu0 %164  ;;  %v1516_v28 = vpop.permute.xlu1 %159  ;;  %v111_v12 = vmul.f32 %v1423_v38, %v1447_v53  ;;  %v296_v13 = vmax.f32 %v1506_v17, 0.0  ;;  %v278_v46 = vmax.f32 %v214_v4, 0.0 }
  0x89   :  { %v193_v24 = vadd.f32 %v1514_v27, %v105_v14  ;;  %v194_v31 = vadd.f32 %v1514_v27, %v106_v18  ;;  %v195_v32 = vadd.f32 %v1514_v27, %v107_v19  ;;  %v196_v33 = vadd.f32 %v1514_v27, %v108_v21 }
  0x8a   :  { %v177_v34 = vadd.f32 %v1516_v28, %v89_v44  ;;  %v178_v40 = vadd.f32 %v1516_v28, %v90_v45  ;;  %v179_v41 = vadd.f32 %v1516_v28, %v91_v48  ;;  %v180_v42 = vadd.f32 %v1516_v28, %v92_v49 }
  0x8b   :  { %v257_v43 = vmax.f32 %v193_v24, 0.0  ;;  %v258_v54 = vmax.f32 %v194_v31, 0.0  ;;  %v259_v58 = vmax.f32 %v195_v32, 0.0  ;;  %v260_v59 = vmax.f32 %v196_v33, 0.0 }
  0x8c   :  { %v146_v44 = vmul.f32 %v1440_v50, %v1401_v26  ;;  %v241_v45 = vmax.f32 %v177_v34, 0.0  ;;  %v242_v48 = vmax.f32 %v178_v40, 0.0  ;;  %v213_v49 = vadd.f32 %v1391_v20, %v125_v30 }
  0x8d   :  { %360 = vmatpush.msra.mxu0 %v257_v43  ;;  %389 = vmatpush.msra.mxu1 %v258_v54  ;;  %v243_v0 = vmax.f32 %v179_v41, 0.0  ;;  %v244_v2 = vmax.f32 %v180_v42, 0.0  ;;  %v216_v14 = vadd.f32 %v1391_v20, %v128_v61  ;;  %v197_v37 = vadd.f32 %v1514_v27, %v109_v10 }
  0x8e   :  { %418 = vmatpush.msra.mxu2 %v259_v58  ;;  %447 = vmatpush.msra.mxu3 %v260_v59  ;;  %v277_v36 = vmax.f32 %v213_v49, 0.0  ;;  %v198_v38 = vadd.f32 %v1514_v27, %v110_v11  ;;  %v199_v17 = vadd.f32 %v1514_v27, %v111_v12  ;;  %v200_v18 = vadd.f32 %v1514_v27, %v112_v15 }
  0x8f   :  { %361 = vmatpush.msra.mxu0 %v241_v45  ;;  %390 = vmatpush.msra.mxu1 %v242_v48  ;;  %v181_v19 = vadd.f32 %v1516_v28, %v1453_v55  ;;  %v182_v21 = vadd.f32 %v1516_v28, %v1457_v56  ;;  %v279_v30 = vmax.f32 %v215_v5, 0.0  ;;  %v183_v22 = vadd.f32 %v1516_v28, %v1477_v1 }
  0x90   :  { %419 = vmatpush.msra.mxu2 %v243_v0  ;;  %448 = vmatpush.msra.mxu3 %v244_v2  ;;  %v184_v23 = vadd.f32 %v1516_v28, %v1488_v7  ;;  %v233_v24 = vadd.f32 %v1399_v25, %v145_v62  ;;  %v280_v31 = vmax.f32 %v216_v14, 0.0  ;;  %v234_v32 = vadd.f32 %v1399_v25, %v146_v44  ;;  %v1605_v2 = vld [vmem:[%s1977_s3 + $0x8] sm:$0xff] }
  0x91   :  { %1200 = vmatmul.msk.f32.vlgmr.msra.gmra.mxu0 %vm333_vm0, %v1546_v3  ;;  %1204 = vmatmul.msk.f32.vlgmr.msra.gmra.mxu1 %vm333_vm0, %v1546_v3  ;;  %v129_v55 = vmul.f32 %v1433_v47, %v1445_v52  ;;  %v130_v56 = vmul.f32 %v1440_v50, %v1445_v52  ;;  %v262_v1 = vmax.f32 %v198_v38, 0.0  ;;  %v235_v33 = vadd.f32 %v1399_v25, %v147_v63 }
  0x92   :  { %1208 = vmatmul.msk.f32.vlgmr.msra.gmra.mxu2 %vm333_vm0, %v1546_v3  ;;  %1212 = vmatmul.msk.f32.vlgmr.msra.gmra.mxu3 %vm333_vm0, %v1546_v3  ;;  %v131_v7 = vmul.f32 %v1443_v51, %v1445_v52  ;;  %v263_v34 = vmax.f32 %v199_v17, 0.0  ;;  %v264_v40 = vmax.f32 %v200_v18, 0.0  ;;  %v236_v41 = vadd.f32 %v1399_v25, %v148_v16 }
  0x93   :  { %474 = vmatpush.msrb.mxu0 %v293_v29  ;;  %503 = vmatpush.msrb.mxu1 %v294_v60  ;;  %v261_v29 = vmax.f32 %v197_v37, 0.0  ;;  %v132_v42 = vmul.f32 %v1460_v57, %v1445_v52  ;;  %v245_v43 = vmax.f32 %v181_v19, 0.0  ;;  %v246_v54 = vmax.f32 %v182_v21, 0.0 }
  0x94   :  { %532 = vmatpush.msrb.mxu2 %v295_v6  ;;  %561 = vmatpush.msrb.mxu3 %v296_v13  ;;  %v247_v58 = vmax.f32 %v183_v22, 0.0  ;;  %v248_v59 = vmax.f32 %v184_v23, 0.0  ;;  %v297_v60 = vmax.f32 %v233_v24, 0.0  ;;  %v298_v61 = vmax.f32 %v234_v32, 0.0  ;;  %v1637_v22 = vld [vmem:[%s1977_s3 + $0x10] sm:$0xff] }
  0x95   :  { %475 = vmatpush.msrb.mxu0 %v277_v36  ;;  %504 = vmatpush.msrb.mxu1 %v278_v46  ;;  %v217_v62 = vadd.f32 %v1391_v20, %v129_v55  ;;  %v218_v44 = vadd.f32 %v1391_v20, %v130_v56  ;;  %v299_v45 = vmax.f32 %v235_v33, 0.0  ;;  %v219_v48 = vadd.f32 %v1391_v20, %v131_v7  ;;  %v1654_v55 = vld [vmem:[%s1977_s3 + $0x18] sm:$0xff]  ;;  %s1296_s3 = smov [#allocation3]  }
  0x96   :  { %533 = vmatpush.msrb.mxu2 %v279_v30  ;;  %562 = vmatpush.msrb.mxu3 %v280_v31  ;;  %v113_v49 = vmul.f32 %v1433_v47, %v1447_v53  ;;  %v114_v63 = vmul.f32 %v1440_v50, %v1447_v53  ;;  %v300_v0 = vmax.f32 %v236_v41, 0.0  ;;  %v220_v4 = vadd.f32 %v1391_v20, %v132_v42  ;;  %s1189_s17 = sshll.u32 %s1296_s3, 4  ;;  %s1190_s17 = int_to_ptr.vmem [resolvable:$true] %s1189_s17 }
  0x97   :  { %476 = vmatpush.msrb.mxu0 %v261_v29  ;;  %505 = vmatpush.msrb.mxu1 %v262_v1  ;;  %v115_v5 = vmul.f32 %v1443_v51, %v1447_v53  ;;  %v116_v6 = vmul.f32 %v1460_v57, %v1447_v53  ;;  %v99_v10 = vmul.f32 %v1443_v51, %v1425_v39  ;;  %v281_v14 = vmax.f32 %v217_v62, 0.0 }
  0x98   :  { %534 = vmatpush.msrb.mxu2 %v263_v34  ;;  %563 = vmatpush.msrb.mxu3 %v264_v40  ;;  %v201_v47 = vadd.f32 %v1514_v27, %v113_v49  ;;  %v202_v50 = vadd.f32 %v1514_v27, %v114_v63  ;;  %v100_v13 = vmul.f32 %v1460_v57, %v1425_v39  ;;  %v282_v15 = vmax.f32 %v218_v44, 0.0 }
  0x99   :  { %477 = vmatpush.msrb.mxu0 %v245_v43  ;;  %506 = vmatpush.msrb.mxu1 %v246_v54  ;;  %v203_v11 = vadd.f32 %v1514_v27, %v115_v5  ;;  %v204_v12 = vadd.f32 %v1514_v27, %v116_v6  ;;  %v185_v51 = vadd.f32 %v1516_v28, %v1492_v8  ;;  %v283_v57 = vmax.f32 %v219_v48, 0.0 }
  0x9a   :  { %535 = vmatpush.msrb.mxu2 %v247_v58  ;;  %564 = vmatpush.msrb.mxu3 %v248_v59  ;;  %v186_v16 = vadd.f32 %v1516_v28, %v1496_v9  ;;  %v284_v36 = vmax.f32 %v220_v4, 0.0  ;;  %v187_v37 = vadd.f32 %v1516_v28, %v99_v10  ;;  %v188_v38 = vadd.f32 %v1516_v28, %v100_v13 }
  0x9b   :  { %590 = vmatpush.msra.mxu0 %v297_v60  ;;  %619 = vmatpush.msra.mxu1 %v298_v61  ;;  %v265_v17 = vmax.f32 %v201_v47, 0.0  ;;  %v266_v46 = vmax.f32 %v202_v50, 0.0  ;;  %v267_v8 = vmax.f32 %v203_v11, 0.0  ;;  %v268_v9 = vmax.f32 %v204_v12, 0.0 }
  0x9c   :  { %648 = vmatpush.msra.mxu2 %v299_v45  ;;  %677 = vmatpush.msra.mxu3 %v300_v0  ;;  %v249_v18 = vmax.f32 %v185_v51, 0.0  ;;  %v250_v19 = vmax.f32 %v186_v16, 0.0  ;;  %v251_v21 = vmax.f32 %v187_v37, 0.0  ;;  %v252_v30 = vmax.f32 %v188_v38, 0.0 }
  0x9d   :  { %1201 = vmatmul.msk.f32.gmra.mxu0 %vm333_vm0, %v1605_v2  ;;  %1205 = vmatmul.msk.f32.gmra.mxu1 %vm333_vm0, %v1605_v2  ;;  %v69_v23 = vperm.slane %v1417_v35, 4  ;;  %v70_v24 = vperm.slane %v1417_v35, 5  ;;  %v71_v32 = vperm.slane %v1417_v35, 6  ;;  %v72_v29 = vperm.slane %v1417_v35, 7 }
  0x9e   :  { %1209 = vmatmul.msk.f32.gmra.mxu2 %vm333_vm0, %v1605_v2  ;;  %1213 = vmatmul.msk.f32.gmra.mxu3 %vm333_vm0, %v1605_v2 }
  0x9f   :  { %591 = vmatpush.msra.mxu0 %v281_v14  ;;  %620 = vmatpush.msra.mxu1 %v282_v15  ;;  %v149_v31 = vmul.f32 %v69_v23, %v1401_v26  ;;  %v150_v56 = vmul.f32 %v70_v24, %v1401_v26  ;;  %v151_v33 = vmul.f32 %v71_v32, %v1401_v26 }
  0xa0   :  { %649 = vmatpush.msra.mxu2 %v283_v57  ;;  %678 = vmatpush.msra.mxu3 %v284_v36  ;;  %v152_v35 = vmul.f32 %v72_v29, %v1401_v26  ;;  %v133_v34 = vmul.f32 %v69_v23, %v1445_v52  ;;  %v134_v40 = vmul.f32 %v70_v24, %v1445_v52 }
  0xa1   :  { %592 = vmatpush.msra.mxu0 %v265_v17  ;;  %621 = vmatpush.msra.mxu1 %v266_v46  ;;  %v237_v1 = vadd.f32 %v1399_v25, %v149_v31  ;;  %v238_v7 = vadd.f32 %v1399_v25, %v150_v56  ;;  %v135_v41 = vmul.f32 %v71_v32, %v1445_v52 }
  0xa2   :  { %650 = vmatpush.msra.mxu2 %v267_v8  ;;  %679 = vmatpush.msra.mxu3 %v268_v9  ;;  %v136_v42 = vmul.f32 %v72_v29, %v1445_v52  ;;  %v239_v54 = vadd.f32 %v1399_v25, %v151_v33  ;;  %v240_v59 = vadd.f32 %v1399_v25, %v152_v35 }
  0xa3   :  { %593 = vmatpush.msra.mxu0 %v249_v18  ;;  %622 = vmatpush.msra.mxu1 %v250_v19  ;;  %v301_v43 = vmax.f32 %v237_v1, 0.0  ;;  %v302_v58 = vmax.f32 %v238_v7, 0.0  ;;  %v221_v60 = vadd.f32 %v1391_v20, %v133_v34  ;;  %v117_v61 = vmul.f32 %v69_v23, %v1447_v53  ;;  %v1792_v18 = vpop.permute.xlu2 %315  ;;  %v1794_v19 = vpop.permute.xlu0 %320 }
  0xa4   :  { %651 = vmatpush.msra.mxu2 %v251_v21  ;;  %680 = vmatpush.msra.mxu3 %v252_v30  ;;  %v222_v26 = vadd.f32 %v1391_v20, %v134_v40  ;;  %v223_v62 = vadd.f32 %v1391_v20, %v135_v41  ;;  %v118_v44 = vmul.f32 %v70_v24, %v1447_v53  ;;  %v303_v63 = vmax.f32 %v239_v54, 0.0 }
  0xa5   :  { %1202 = vmatmul.msk.f32.gmra.mxu0 %vm333_vm0, %v1637_v22  ;;  %1206 = vmatmul.msk.f32.gmra.mxu1 %vm333_vm0, %v1637_v22  ;;  %v119_v45 = vmul.f32 %v71_v32, %v1447_v53  ;;  %v224_v52 = vadd.f32 %v1391_v20, %v136_v42  ;;  %v205_v48 = vadd.f32 %v1514_v27, %v117_v61  ;;  %v304_v20 = vmax.f32 %v240_v59, 0.0 }
  0xa6   :  { %1210 = vmatmul.msk.f32.gmra.mxu2 %vm333_vm0, %v1637_v22  ;;  %1214 = vmatmul.msk.f32.gmra.mxu3 %vm333_vm0, %v1637_v22  ;;  %v120_v49 = vmul.f32 %v72_v29, %v1447_v53  ;;  %v101_v25 = vmul.f32 %v69_v23, %v1425_v39  ;;  %v206_v0 = vadd.f32 %v1514_v27, %v118_v44  ;;  %v285_v50 = vmax.f32 %v221_v60, 0.0 }
  0xa7   :  { %v207_v4 = vadd.f32 %v1514_v27, %v119_v45  ;;  %v102_v5 = vmul.f32 %v70_v24, %v1425_v39  ;;  %v103_v6 = vmul.f32 %v71_v32, %v1425_v39  ;;  %v104_v47 = vmul.f32 %v72_v29, %v1425_v39  ;;  %v1796_v24 = vpop.permute.xlu1 %325 }
  0xa8   :  { %v208_v53 = vadd.f32 %v1514_v27, %v120_v49  ;;  %v286_v10 = vmax.f32 %v222_v26, 0.0  ;;  %v189_v11 = vadd.f32 %v1516_v28, %v101_v25  ;;  %v287_v13 = vmax.f32 %v223_v62, 0.0 }
  0xa9   :  { %v190_v12 = vadd.f32 %v1516_v28, %v102_v5  ;;  %v288_v14 = vmax.f32 %v224_v52, 0.0  ;;  %v191_v15 = vadd.f32 %v1516_v28, %v103_v6  ;;  %v192_v27 = vadd.f32 %v1516_v28, %v104_v47 }
  0xaa   :  { %v269_v51 = vmax.f32 %v205_v48, 0.0  ;;  %v270_v39 = vmax.f32 %v206_v0, 0.0  ;;  %v271_v16 = vmax.f32 %v207_v4, 0.0  ;;  %v272_v57 = vmax.f32 %v208_v53, 0.0 }
  0xab   :  { %v253_v36 = vmax.f32 %v189_v11, 0.0  ;;  %v254_v37 = vmax.f32 %v190_v12, 0.0  ;;  %v255_v38 = vmax.f32 %v191_v15, 0.0  ;;  %v256_v17 = vmax.f32 %v192_v27, 0.0  ;;  %v1798_v31 = vpop.permute.xlu2 %330  ;;  %v1800_v32 = vpop.permute.xlu0 %880 }
  0xad   :  { %1203 = vmatmul.msk.f32.gmra.mxu0 %vm333_vm0, %v1654_v55  ;;  %1207 = vmatmul.msk.f32.gmra.mxu1 %vm333_vm0, %v1654_v55 }
  0xae   :  { %1211 = vmatmul.msk.f32.gmra.mxu2 %vm333_vm0, %v1654_v55  ;;  %1215 = vmatmul.msk.f32.gmra.mxu3 %vm333_vm0, %v1654_v55 }
  0xaf   :  { %v1813_v62 = vpop.permute.xlu1 %885 }
  0xb3   :  { %v1820_v0 = vpop.permute.xlu0 %895 }
  0xb5   :  { %1216 = vmatmul.msk.f32.vlgmr.msrb.gmra.mxu0 %vm333_vm0, %v1546_v3  ;;  %1220 = vmatmul.msk.f32.vlgmr.msrb.gmra.mxu1 %vm333_vm0, %v1546_v3 }
  0xb6   :  { %1224 = vmatmul.msk.f32.vlgmr.msrb.gmra.mxu2 %vm333_vm0, %v1546_v3  ;;  %1228 = vmatmul.msk.f32.vlgmr.msrb.gmra.mxu3 %vm333_vm0, %v1546_v3 }
  0xb7   :  { %706 = vmatpush.msrb.mxu0 %v301_v43  ;;  %735 = vmatpush.msrb.mxu1 %v302_v58 }
  0xb8   :  { %764 = vmatpush.msrb.mxu2 %v303_v63  ;;  %793 = vmatpush.msrb.mxu3 %v304_v20  ;;  %v1818_v63 = vpop.permute.xlu2 %890 }
  0xb9   :  { %707 = vmatpush.msrb.mxu0 %v285_v50  ;;  %736 = vmatpush.msrb.mxu1 %v286_v10 }
  0xba   :  { %765 = vmatpush.msrb.mxu2 %v287_v13  ;;  %794 = vmatpush.msrb.mxu3 %v288_v14 }
  0xbb   :  { %708 = vmatpush.msrb.mxu0 %v269_v51  ;;  %737 = vmatpush.msrb.mxu1 %v270_v39 }
  0xbc   :  { %766 = vmatpush.msrb.mxu2 %v271_v16  ;;  %795 = vmatpush.msrb.mxu3 %v272_v57 }
  0xbd   :  { %709 = vmatpush.msrb.mxu0 %v253_v36  ;;  %738 = vmatpush.msrb.mxu1 %v254_v37 }
  0xbe   :  { %767 = vmatpush.msrb.mxu2 %v255_v38  ;;  %796 = vmatpush.msrb.mxu3 %v256_v17 }
  0xbf   :  { %1217 = vmatmul.msk.f32.gmra.mxu0 %vm333_vm0, %v1605_v2  ;;  %1221 = vmatmul.msk.f32.gmra.mxu1 %vm333_vm0, %v1605_v2 }
  0xc0   :  { %1225 = vmatmul.msk.f32.gmra.mxu2 %vm333_vm0, %v1605_v2  ;;  %1229 = vmatmul.msk.f32.gmra.mxu3 %vm333_vm0, %v1605_v2 }
  0xc7   :  { %1218 = vmatmul.msk.f32.gmra.mxu0 %vm333_vm0, %v1637_v22  ;;  %1222 = vmatmul.msk.f32.gmra.mxu1 %vm333_vm0, %v1637_v22 }
  0xc8   :  { %1226 = vmatmul.msk.f32.gmra.mxu2 %vm333_vm0, %v1637_v22  ;;  %1230 = vmatmul.msk.f32.gmra.mxu3 %vm333_vm0, %v1637_v22 }
  0xcf   :  { %1219 = vmatmul.msk.f32.gmra.mxu0 %vm333_vm0, %v1654_v55  ;;  %1223 = vmatmul.msk.f32.gmra.mxu1 %vm333_vm0, %v1654_v55 }
  0xd0   :  { %1227 = vmatmul.msk.f32.gmra.mxu2 %vm333_vm0, %v1654_v55  ;;  %1231 = vmatmul.msk.f32.gmra.mxu3 %vm333_vm0, %v1654_v55 }
  0xd7   :  { %1232 = vmatmul.msk.f32.vlgmr.msra.gmra.mxu0 %vm333_vm0, %v1546_v3  ;;  %1236 = vmatmul.msk.f32.vlgmr.msra.gmra.mxu1 %vm333_vm0, %v1546_v3 }
  0xd8   :  { %1240 = vmatmul.msk.f32.vlgmr.msra.gmra.mxu2 %vm333_vm0, %v1546_v3  ;;  %1244 = vmatmul.msk.f32.vlgmr.msra.gmra.mxu3 %vm333_vm0, %v1546_v3 }
  0xdf   :  { %1233 = vmatmul.msk.f32.gmra.mxu0 %vm333_vm0, %v1605_v2  ;;  %1237 = vmatmul.msk.f32.gmra.mxu1 %vm333_vm0, %v1605_v2 }
  0xe0   :  { %1241 = vmatmul.msk.f32.gmra.mxu2 %vm333_vm0, %v1605_v2  ;;  %1245 = vmatmul.msk.f32.gmra.mxu3 %vm333_vm0, %v1605_v2 }
  0xe7   :  { %1234 = vmatmul.msk.f32.gmra.mxu0 %vm333_vm0, %v1637_v22  ;;  %1238 = vmatmul.msk.f32.gmra.mxu1 %vm333_vm0, %v1637_v22 }
  0xe8   :  { %1242 = vmatmul.msk.f32.gmra.mxu2 %vm333_vm0, %v1637_v22  ;;  %1246 = vmatmul.msk.f32.gmra.mxu3 %vm333_vm0, %v1637_v22 }
  0xef   :  { %1235 = vmatmul.msk.f32.gmra.mxu0 %vm333_vm0, %v1654_v55  ;;  %1239 = vmatmul.msk.f32.gmra.mxu1 %vm333_vm0, %v1654_v55 }
  0xf0   :  { %1243 = vmatmul.msk.f32.gmra.mxu2 %vm333_vm0, %v1654_v55  ;;  %1247 = vmatmul.msk.f32.gmra.mxu3 %vm333_vm0, %v1654_v55 }
  0xf7   :  { %1248 = vmatmul.msk.f32.vlgmr.msrb.gmra.mxu0 %vm333_vm0, %v1546_v3  ;;  %1252 = vmatmul.msk.f32.vlgmr.msrb.gmra.mxu1 %vm333_vm0, %v1546_v3 }
  0xf8   :  { %1256 = vmatmul.msk.f32.vlgmr.msrb.gmra.mxu2 %vm333_vm0, %v1546_v3  ;;  %1260 = vmatmul.msk.f32.vlgmr.msrb.gmra.mxu3 %vm333_vm0, %v1546_v3 }
  0xff   :  { %1249 = vmatmul.msk.f32.gmra.mxu0 %vm333_vm0, %v1605_v2  ;;  %1253 = vmatmul.msk.f32.gmra.mxu1 %vm333_vm0, %v1605_v2 }
 0x100   :  { %1257 = vmatmul.msk.f32.gmra.mxu2 %vm333_vm0, %v1605_v2  ;;  %1261 = vmatmul.msk.f32.gmra.mxu3 %vm333_vm0, %v1605_v2 }
 0x107   :  { %1250 = vmatmul.msk.f32.gmra.mxu0 %vm333_vm0, %v1637_v22  ;;  %1254 = vmatmul.msk.f32.gmra.mxu1 %vm333_vm0, %v1637_v22 }
 0x108   :  { %1258 = vmatmul.msk.f32.gmra.mxu2 %vm333_vm0, %v1637_v22  ;;  %1262 = vmatmul.msk.f32.gmra.mxu3 %vm333_vm0, %v1637_v22 }
 0x10e   :  { %v363_v28 = vpop.f32.mrf.mxu0  ;;  %v392_v3 = vpop.f32.mrf.mxu1 }
 0x10f   :  { %1251 = vmatmul.msk.f32.gmra.mxu0 %vm333_vm0, %v1654_v55  ;;  %1255 = vmatmul.msk.f32.gmra.mxu1 %vm333_vm0, %v1654_v55  ;;  %v393_v56 = vadd.f32 %v392_v3, %v1792_v18  ;;  %v364_v43 = vadd.f32 %v363_v28, %v1792_v18 }
 0x110   :  { %1259 = vmatmul.msk.f32.gmra.mxu2 %vm333_vm0, %v1654_v55  ;;  %1263 = vmatmul.msk.f32.gmra.mxu3 %vm333_vm0, %v1654_v55 }
 0x111   :  { %v811_v54 = vmax.f32 %v393_v56, 0.0  ;;  %v810_v4 = vmax.f32 %v364_v43, 0.0 }
 0x113   :  { %v899_v5 = vmul.f32 %v1800_v32, %v811_v54 }
 0x115   :  { %v421_v2 = vpop.f32.mrf.mxu2  ;;  %v450_v46 = vpop.f32.mrf.mxu3 }
 0x116   :  { %v422_v40 = vadd.f32 %v421_v2, %v1792_v18  ;;  %v451_v60 = vadd.f32 %v450_v46, %v1792_v18 }
 0x118   :  { %v812_v52 = vmax.f32 %v422_v40, 0.0  ;;  %v813_v6 = vmax.f32 %v451_v60, 0.0 }
 0x11a   :  { %v366_v8 = vpop.f32.mrf.mxu0  ;;  %v395_v9 = vpop.f32.mrf.mxu1  ;;  %v900_v16 = vmul.f32 %v1800_v32, %v812_v52 }
 0x11b   :  { %v396_v55 = vadd.f32 %v395_v9, %v1794_v19  ;;  %v367_v61 = vadd.f32 %v366_v8, %v1794_v19  ;;  %v901_v9 = vmul.f32 %v1800_v32, %v813_v6 }
 0x11d   :  { %v827_v41 = vmax.f32 %v396_v55, 0.0  ;;  %v826_v47 = vmax.f32 %v367_v61, 0.0 }
 0x11f   :  { %v915_v48 = vmul.f32 %v1813_v62, %v827_v41  ;;  %v914_v2 = vmul.f32 %v1813_v62, %v826_v47 }
 0x121   :  { %v424_v21 = vpop.f32.mrf.mxu2  ;;  %v453_v30 = vpop.f32.mrf.mxu3  ;;  %v971_v57 = vadd.f32 %v915_v48, %v899_v5 }
 0x122   :  { %v369_v22 = vpop.f32.mrf.mxu0  ;;  %v398_v23 = vpop.f32.mrf.mxu1  ;;  %v425_v7 = vadd.f32 %v424_v21, %v1794_v19  ;;  %v454_v58 = vadd.f32 %v453_v30, %v1794_v19 }
 0x123   :  { %v399_v29 = vadd.f32 %v398_v23, %v1796_v24  ;;  %v370_v49 = vadd.f32 %v369_v22, %v1796_v24  ;;  %v898_v23 = vmul.f32 %v1800_v32, %v810_v4 }
 0x124   :  { %v828_v44 = vmax.f32 %v425_v7, 0.0  ;;  %v829_v20 = vmax.f32 %v454_v58, 0.0 }
 0x125   :  { %v843_v26 = vmax.f32 %v399_v29, 0.0  ;;  %v842_v36 = vmax.f32 %v370_v49, 0.0  ;;  %v962_v7 = vadd.f32 %v914_v2, %v898_v23 }
 0x126   :  { %v916_v13 = vmul.f32 %v1813_v62, %v828_v44  ;;  %v917_v38 = vmul.f32 %v1813_v62, %v829_v20 }
 0x127   :  { %v931_v50 = vmul.f32 %v1818_v63, %v843_v26  ;;  %v930_v55 = vmul.f32 %v1818_v63, %v842_v36 }
 0x128   :  { %v980_v21 = vadd.f32 %v916_v13, %v900_v16  ;;  %v989_v29 = vadd.f32 %v917_v38, %v901_v9 }
 0x129   :  { %v427_v1 = vpop.f32.mrf.mxu2  ;;  %v456_v33 = vpop.f32.mrf.mxu3  ;;  %v972_v46 = vadd.f32 %v971_v57, %v931_v50  ;;  %v963_v43 = vadd.f32 %v962_v7, %v930_v55 }
 0x12a   :  { %v372_v35 = vpop.f32.mrf.mxu0  ;;  %v401_v34 = vpop.f32.mrf.mxu1  ;;  %v428_v59 = vadd.f32 %v427_v1, %v1796_v24  ;;  %v457_v45 = vadd.f32 %v456_v33, %v1796_v24 }
 0x12b   :  { %v402_v42 = vadd.f32 %v401_v34, %v1798_v31  ;;  %v373_v10 = vadd.f32 %v372_v35, %v1798_v31 }
 0x12c   :  { %v844_v53 = vmax.f32 %v428_v59, 0.0  ;;  %v845_v14 = vmax.f32 %v457_v45, 0.0 }
 0x12d   :  { %v859_v25 = vmax.f32 %v402_v42, 0.0  ;;  %v858_v8 = vmax.f32 %v373_v10, 0.0 }
 0x12e   :  { %v932_v17 = vmul.f32 %v1818_v63, %v844_v53  ;;  %v933_v30 = vmul.f32 %v1818_v63, %v845_v14 }
 0x12f   :  { %v947_v37 = vmul.f32 %v1820_v0, %v859_v25  ;;  %v946_v35 = vmul.f32 %v1820_v0, %v858_v8 }
 0x130   :  { %v981_v1 = vadd.f32 %v980_v21, %v932_v17  ;;  %v990_v41 = vadd.f32 %v989_v29, %v933_v30 }
 0x131   :  { %v430_v11 = vpop.f32.mrf.mxu2  ;;  %v459_v12 = vpop.f32.mrf.mxu3  ;;  %v973_v56 = vadd.f32 %v972_v46, %v947_v37  ;;  %v964_v61 = vadd.f32 %v963_v43, %v946_v35 }
 0x132   :  { %v431_v15 = vadd.f32 %v430_v11, %v1798_v31  ;;  %v460_v27 = vadd.f32 %v459_v12, %v1798_v31  ;;  %v479_v51 = vpop.f32.mrf.mxu0  ;;  %v508_v39 = vpop.f32.mrf.mxu1 }
 0x133   :  { %v974_v54 = vrot.slane %v973_v56, 4  ;;  %v965_v52 = vrot.slane %v964_v61, 4  ;;  %v480_v48 = vadd.f32 %v479_v51, %v1792_v18  ;;  %v509_v4 = vadd.f32 %v508_v39, %v1792_v18  ;;  %v1110_v11 = vpop.permute.xlu1 %1109 }
 0x134   :  { %v860_v28 = vmax.f32 %v431_v15, 0.0  ;;  %v861_v3 = vmax.f32 %v460_v27, 0.0  ;;  %v1846_v36 = vperm.slane %v1110_v11, 0 }
 0x135   :  { %v975_v44 = vadd.f32 %v974_v54, %v973_v56  ;;  %v966_v12 = vadd.f32 %v965_v52, %v964_v61  ;;  %v814_v13 = vmax.f32 %v480_v48, 0.0  ;;  %v815_v16 = vmax.f32 %v509_v4, 0.0 }
 0x136   :  { %v948_v22 = vmul.f32 %v1820_v0, %v860_v28  ;;  %v949_v33 = vmul.f32 %v1820_v0, %v861_v3 }
 0x137   :  { %v976_v25 = vrot.slane %v975_v44, 2  ;;  %v967_v17 = vrot.slane %v966_v12, 2  ;;  %v902_v28 = vmul.f32 %v1800_v32, %v814_v13 }
 0x138   :  { %v982_v42 = vadd.f32 %v981_v1, %v948_v22  ;;  %v991_v58 = vadd.f32 %v990_v41, %v949_v33  ;;  %v903_v22 = vmul.f32 %v1800_v32, %v815_v16 }
 0x139   :  { %v537_v34 = vpop.f32.mrf.mxu2  ;;  %v566_v40 = vpop.f32.mrf.mxu3  ;;  %v977_v51 = vadd.f32 %v976_v25, %v975_v44  ;;  %v968_v48 = vadd.f32 %v967_v17, %v966_v12 }
 0x13a   :  { %v983_v26 = vrot.slane %v982_v42, 4  ;;  %v992_v45 = vrot.slane %v991_v58, 4  ;;  %v538_v38 = vadd.f32 %v537_v34, %v1792_v18  ;;  %v567_v8 = vadd.f32 %v566_v40, %v1792_v18 }
 0x13b   :  { %v978_v30 = vrot.slane %v977_v51, 1 }
 0x13c   :  { %v482_v59 = vpop.f32.mrf.mxu0  ;;  %v511_v60 = vpop.f32.mrf.mxu1  ;;  %v984_v49 = vadd.f32 %v983_v26, %v982_v42  ;;  %v993_v47 = vadd.f32 %v992_v45, %v991_v58  ;;  %v816_v33 = vmax.f32 %v538_v38, 0.0 }
 0x13d   :  { %v483_v5 = vadd.f32 %v482_v59, %v1794_v19  ;;  %v512_v20 = vadd.f32 %v511_v60, %v1794_v19  ;;  %v817_v59 = vmax.f32 %v567_v8, 0.0 }
 0x13e   :  { %v985_v27 = vrot.slane %v984_v49, 2  ;;  %v994_v37 = vrot.slane %v993_v47, 2 }
 0x13f   :  { %v830_v39 = vmax.f32 %v483_v5, 0.0  ;;  %v831_v57 = vmax.f32 %v512_v20, 0.0 }
 0x140   :  { %v986_v46 = vadd.f32 %v985_v27, %v984_v49  ;;  %v995_v1 = vadd.f32 %v994_v37, %v993_v47  ;;  %v979_v47 = vadd.f32 %v978_v30, %v977_v51 }
 0x141   :  { %v918_v23 = vmul.f32 %v1813_v62, %v830_v39  ;;  %v919_v55 = vmul.f32 %v1813_v62, %v831_v57 }
 0x142   :  { %v987_v58 = vrot.slane %v986_v46, 1  ;;  %v996_v49 = vrot.slane %v995_v1, 1 }
 0x143   :  { %v540_v53 = vpop.f32.mrf.mxu2  ;;  %v569_v6 = vpop.f32.mrf.mxu3  ;;  %v998_v26 = vadd.f32 %v918_v23, %v902_v28  ;;  %v1007_v44 = vadd.f32 %v919_v55, %v903_v22  ;;  %v969_v28 = vrot.slane %v968_v48, 1  ;;  %v1114_v22 = vadd.f32 %v1846_v36, %v979_v47 }
 0x144   :  { %v485_v50 = vpop.f32.mrf.mxu0  ;;  %v514_v10 = vpop.f32.mrf.mxu1  ;;  %v541_v9 = vadd.f32 %v540_v53, %v1794_v19  ;;  %v570_v21 = vadd.f32 %v569_v6, %v1794_v19  ;;  %v988_v13 = vadd.f32 %v987_v58, %v986_v46 }
 0x145   :  { %v486_v14 = vadd.f32 %v485_v50, %v1796_v24  ;;  %v515_v15 = vadd.f32 %v514_v10, %v1796_v24  ;;  %v904_v50 = vmul.f32 %v1800_v32, %v816_v33 }
 0x146   :  { %v832_v60 = vmax.f32 %v541_v9, 0.0  ;;  %v833_v61 = vmax.f32 %v570_v21, 0.0  ;;  %v1115_v23 = vadd.f32 %v1846_v36, %v988_v13 }
 0x147   :  { %v846_v3 = vmax.f32 %v486_v14, 0.0  ;;  %v847_v2 = vmax.f32 %v515_v15, 0.0  ;;  %v905_v14 = vmul.f32 %v1800_v32, %v817_v59 }
 0x148   :  { %v920_v10 = vmul.f32 %v1813_v62, %v832_v60  ;;  %v921_v11 = vmul.f32 %v1813_v62, %v833_v61  ;;  %v1145_v61 = vrot.slane %v1114_v22, 7 }
 0x149   :  { %v934_v41 = vmul.f32 %v1818_v63, %v846_v3  ;;  %v935_v42 = vmul.f32 %v1818_v63, %v847_v2  ;;  %v997_v3 = vadd.f32 %v996_v49, %v995_v1 }
 0x14a   :  { %v1016_v8 = vadd.f32 %v920_v10, %v904_v50  ;;  %v1025_v9 = vadd.f32 %v921_v11, %v905_v14 }
 0x14b   :  { %v543_v56 = vpop.f32.mrf.mxu2  ;;  %v572_v29 = vpop.f32.mrf.mxu3  ;;  %v999_v5 = vadd.f32 %v998_v26, %v934_v41  ;;  %v1008_v20 = vadd.f32 %v1007_v44, %v935_v42  ;;  %v1116_v1 = vadd.f32 %v1846_v36, %v997_v3  ;;  %v1146_v26 = vrot.slane %v1115_v23, 6 }
 0x14c   :  { %v544_v7 = vadd.f32 %v543_v56, %v1796_v24  ;;  %v573_v35 = vadd.f32 %v572_v29, %v1796_v24  ;;  %v488_v34 = vpop.f32.mrf.mxu0  ;;  %v517_v40 = vpop.f32.mrf.mxu1 }
 0x14d   :  { %v489_v43 = vadd.f32 %v488_v34, %v1798_v31  ;;  %v518_v54 = vadd.f32 %v517_v40, %v1798_v31 }
 0x14e   :  { %v848_v25 = vmax.f32 %v544_v7, 0.0  ;;  %v849_v4 = vmax.f32 %v573_v35, 0.0 }
 0x14f   :  { %v862_v45 = vmax.f32 %v489_v43, 0.0  ;;  %v863_v52 = vmax.f32 %v518_v54, 0.0  ;;  %v970_v43 = vadd.f32 %v969_v28, %v968_v48 }
 0x150   :  { %v936_v39 = vmul.f32 %v1818_v63, %v848_v25  ;;  %v937_v57 = vmul.f32 %v1818_v63, %v849_v4  ;;  %v1147_v25 = vrot.slane %v1116_v1, 5 }
 0x151   :  { %v950_v53 = vmul.f32 %v1820_v0, %v862_v45  ;;  %v951_v6 = vmul.f32 %v1820_v0, %v863_v52  ;;  %v1113_v10 = vadd.f32 %v1846_v36, %v970_v43 }
 0x152   :  { %v1017_v29 = vadd.f32 %v1016_v8, %v936_v39  ;;  %v1026_v33 = vadd.f32 %v1025_v9, %v937_v57 }
 0x153   :  { %v1000_v12 = vadd.f32 %v999_v5, %v950_v53  ;;  %v1009_v15 = vadd.f32 %v1008_v20, %v951_v6  ;;  %v546_v27 = vpop.f32.mrf.mxu2  ;;  %v575_v16 = vpop.f32.mrf.mxu3  ;;  %v1160_v39 = vsel %vm1159_vm2, %v1113_v10, %v1145_v61 }
 0x154   :  { %v547_v37 = vadd.f32 %v546_v27, %v1798_v31  ;;  %v576_v51 = vadd.f32 %v575_v16, %v1798_v31  ;;  %v595_v38 = vpop.f32.mrf.mxu0  ;;  %v624_v17 = vpop.f32.mrf.mxu1 }
 0x155   :  { %v1001_v2 = vrot.slane %v1000_v12, 4  ;;  %v1010_v46 = vrot.slane %v1009_v15, 4  ;;  %v596_v20 = vadd.f32 %v595_v38, %v1792_v18  ;;  %v625_v47 = vadd.f32 %v624_v17, %v1792_v18 }
 0x156   :  { %v864_v21 = vmax.f32 %v547_v37, 0.0  ;;  %v865_v30 = vmax.f32 %v576_v51, 0.0 }
 0x157   :  { %v1002_v55 = vadd.f32 %v1001_v2, %v1000_v12  ;;  %v1011_v56 = vadd.f32 %v1010_v46, %v1009_v15  ;;  %v818_v14 = vmax.f32 %v596_v20, 0.0  ;;  %v1162_v12 = vsel %vm1161_vm1, %v1146_v26, %v1147_v25 }
 0x158   :  { %v952_v7 = vmul.f32 %v1820_v0, %v864_v21  ;;  %v953_v35 = vmul.f32 %v1820_v0, %v865_v30  ;;  %v819_v16 = vmax.f32 %v625_v47, 0.0  ;;  %v1164_v9 = vsel %vm1163_vm3, %v1160_v39, %v1162_v12 }
 0x159   :  { %v1003_v34 = vrot.slane %v1002_v55, 2  ;;  %v1012_v40 = vrot.slane %v1011_v56, 2  ;;  %v906_v21 = vmul.f32 %v1800_v32, %v818_v14 }
 0x15a   :  { %v1018_v41 = vadd.f32 %v1017_v29, %v952_v7  ;;  %v1027_v42 = vadd.f32 %v1026_v33, %v953_v35  ;;  %v907_v29 = vmul.f32 %v1800_v32, %v819_v16 }
 0x15b   :  { %v1004_v54 = vadd.f32 %v1003_v34, %v1002_v55  ;;  %v1013_v58 = vadd.f32 %v1012_v40, %v1011_v56  ;;  %v653_v59 = vpop.f32.mrf.mxu2  ;;  %v682_v60 = vpop.f32.mrf.mxu3 }
 0x15c   :  { %v1019_v44 = vrot.slane %v1018_v41, 4  ;;  %v1028_v45 = vrot.slane %v1027_v42, 4  ;;  %v598_v52 = vpop.f32.mrf.mxu0  ;;  %v627_v49 = vpop.f32.mrf.mxu1  ;;  %v654_v30 = vadd.f32 %v653_v59, %v1792_v18  ;;  %v683_v33 = vadd.f32 %v682_v60, %v1792_v18 }
 0x15d   :  { %v1005_v4 = vrot.slane %v1004_v54, 1  ;;  %v1014_v5 = vrot.slane %v1013_v58, 1  ;;  %v599_v51 = vadd.f32 %v598_v52, %v1794_v19  ;;  %v628_v38 = vadd.f32 %v627_v49, %v1794_v19 }
 0x15e   :  { %v1020_v53 = vadd.f32 %v1019_v44, %v1018_v41  ;;  %v1029_v6 = vadd.f32 %v1028_v45, %v1027_v42  ;;  %v820_v43 = vmax.f32 %v654_v30, 0.0 }
 0x15f   :  { %v1006_v48 = vadd.f32 %v1005_v4, %v1004_v54  ;;  %v1015_v50 = vadd.f32 %v1014_v5, %v1013_v58  ;;  %v834_v1 = vmax.f32 %v599_v51, 0.0  ;;  %v835_v34 = vmax.f32 %v628_v38, 0.0 }
 0x160   :  { %v1021_v11 = vrot.slane %v1020_v53, 2  ;;  %v1030_v13 = vrot.slane %v1029_v6, 2 }
 0x161   :  { %v1117_v57 = vadd.f32 %v1846_v36, %v1006_v48  ;;  %v1118_v37 = vadd.f32 %v1846_v36, %v1015_v50  ;;  %v922_v60 = vmul.f32 %v1813_v62, %v834_v1  ;;  %v923_v44 = vmul.f32 %v1813_v62, %v835_v34 }
 0x162   :  { %v1022_v15 = vadd.f32 %v1021_v11, %v1020_v53  ;;  %v1031_v27 = vadd.f32 %v1030_v13, %v1029_v6  ;;  %v821_v11 = vmax.f32 %v683_v33, 0.0 }
 0x163   :  { %v656_v17 = vpop.f32.mrf.mxu2  ;;  %v685_v28 = vpop.f32.mrf.mxu3  ;;  %v1148_v7 = vrot.slane %v1117_v57, 4  ;;  %v1149_v35 = vrot.slane %v1118_v37, 3 }
 0x164   :  { %v1023_v3 = vrot.slane %v1022_v15, 1  ;;  %v1032_v2 = vrot.slane %v1031_v27, 1  ;;  %v601_v46 = vpop.f32.mrf.mxu0  ;;  %v630_v8 = vpop.f32.mrf.mxu1  ;;  %v657_v54 = vadd.f32 %v656_v17, %v1794_v19  ;;  %v686_v26 = vadd.f32 %v685_v28, %v1794_v19 }
 0x165   :  { %v602_v22 = vadd.f32 %v601_v46, %v1796_v24  ;;  %v631_v23 = vadd.f32 %v630_v8, %v1796_v24  ;;  %v1166_v49 = vsel %vm1165_vm4, %v1148_v7, %v1149_v35  ;;  %v908_v46 = vmul.f32 %v1800_v32, %v820_v43 }
 0x166   :  { %v1024_v55 = vadd.f32 %v1023_v3, %v1022_v15  ;;  %v1033_v56 = vadd.f32 %v1032_v2, %v1031_v27  ;;  %v836_v13 = vmax.f32 %v657_v54, 0.0  ;;  %v837_v14 = vmax.f32 %v686_v26, 0.0 }
 0x167   :  { %v850_v42 = vmax.f32 %v602_v22, 0.0  ;;  %v851_v58 = vmax.f32 %v631_v23, 0.0  ;;  %v1034_v15 = vadd.f32 %v922_v60, %v906_v21  ;;  %v1043_v27 = vadd.f32 %v923_v44, %v907_v29 }
 0x168   :  { %v1119_v40 = vadd.f32 %v1846_v36, %v1024_v55  ;;  %v1120_v41 = vadd.f32 %v1846_v36, %v1033_v56  ;;  %v924_v3 = vmul.f32 %v1813_v62, %v836_v13  ;;  %v925_v2 = vmul.f32 %v1813_v62, %v837_v14 }
 0x169   :  { %v938_v25 = vmul.f32 %v1818_v63, %v850_v42  ;;  %v939_v47 = vmul.f32 %v1818_v63, %v851_v58  ;;  %v909_v8 = vmul.f32 %v1800_v32, %v821_v11 }
 0x16a   :  { %v1150_v59 = vrot.slane %v1119_v40, 2  ;;  %v1151_v61 = vrot.slane %v1120_v41, 1  ;;  %v1052_v34 = vadd.f32 %v924_v3, %v908_v46 }
 0x16b   :  { %v659_v45 = vpop.f32.mrf.mxu2  ;;  %v688_v52 = vpop.f32.mrf.mxu3  ;;  %v1035_v51 = vadd.f32 %v1034_v15, %v938_v25  ;;  %v1044_v38 = vadd.f32 %v1043_v27, %v939_v47  ;;  %v1061_v40 = vadd.f32 %v925_v2, %v909_v8 }
 0x16c   :  { %v660_v4 = vadd.f32 %v659_v45, %v1796_v24  ;;  %v689_v5 = vadd.f32 %v688_v52, %v1796_v24  ;;  %v604_v20 = vpop.f32.mrf.mxu0  ;;  %v633_v53 = vpop.f32.mrf.mxu1  ;;  %v1168_v6 = vsel %vm1167_vm5, %v1150_v59, %v1151_v61 }
 0x16d   :  { %v605_v48 = vadd.f32 %v604_v20, %v1798_v31  ;;  %v634_v50 = vadd.f32 %v633_v53, %v1798_v31  ;;  %v1170_v10 = vsel %vm1169_vm6, %v1166_v49, %v1168_v6 }
 0x16e   :  { %v1172_v12 = vsel %vm1171_vm7, %v1164_v9, %v1170_v10  ;;  %v852_v57 = vmax.f32 %v660_v4, 0.0  ;;  %v853_v37 = vmax.f32 %v689_v5, 0.0 }
 0x16f   :  { %v866_v16 = vmax.f32 %v605_v48, 0.0  ;;  %v867_v39 = vmax.f32 %v634_v50, 0.0  ;;  %1182 = vst [vmem:[#allocation3] sm:$0xff] %v1172_v12 }
 0x170   :  { %v940_v23 = vmul.f32 %v1818_v63, %v852_v57  ;;  %v941_v55 = vmul.f32 %v1818_v63, %v853_v37 }
 0x171   :  { %v954_v17 = vmul.f32 %v1820_v0, %v866_v16  ;;  %v955_v28 = vmul.f32 %v1820_v0, %v867_v39 }
 0x172   :  { %v1053_v58 = vadd.f32 %v1052_v34, %v940_v23  ;;  %v1062_v59 = vadd.f32 %v1061_v40, %v941_v55 }
 0x173   :  { %v1036_v9 = vadd.f32 %v1035_v51, %v954_v17  ;;  %v1045_v21 = vadd.f32 %v1044_v38, %v955_v28  ;;  %v662_v30 = vpop.f32.mrf.mxu2  ;;  %v691_v22 = vpop.f32.mrf.mxu3 }
 0x174   :  { %v663_v56 = vadd.f32 %v662_v30, %v1798_v31  ;;  %v692_v29 = vadd.f32 %v691_v22, %v1798_v31  ;;  %v711_v33 = vpop.f32.mrf.mxu0  ;;  %v740_v7 = vpop.f32.mrf.mxu1 }
 0x175   :  { %v1037_v35 = vrot.slane %v1036_v9, 4  ;;  %v1046_v1 = vrot.slane %v1045_v21, 4  ;;  %v712_v12 = vadd.f32 %v711_v33, %v1792_v18  ;;  %v741_v57 = vadd.f32 %v740_v7, %v1792_v18 }
 0x176   :  { %v868_v41 = vmax.f32 %v663_v56, 0.0  ;;  %v869_v42 = vmax.f32 %v692_v29, 0.0 }
 0x177   :  { %v1038_v43 = vadd.f32 %v1037_v35, %v1036_v9  ;;  %v1047_v54 = vadd.f32 %v1046_v1, %v1045_v21  ;;  %v822_v2 = vmax.f32 %v712_v12, 0.0  ;;  %v823_v56 = vmax.f32 %v741_v57, 0.0 }
 0x178   :  { %v956_v61 = vmul.f32 %v1820_v0, %v868_v41  ;;  %v957_v26 = vmul.f32 %v1820_v0, %v869_v42 }
 0x179   :  { %v1039_v60 = vrot.slane %v1038_v43, 2  ;;  %v1048_v44 = vrot.slane %v1047_v54, 2  ;;  %v910_v1 = vmul.f32 %v1800_v32, %v822_v2 }
 0x17a   :  { %v1054_v45 = vadd.f32 %v1053_v58, %v956_v61  ;;  %v1063_v52 = vadd.f32 %v1062_v59, %v957_v26  ;;  %v911_v26 = vmul.f32 %v1800_v32, %v823_v56 }
 0x17b   :  { %v1049_v49 = vadd.f32 %v1048_v44, %v1047_v54  ;;  %v769_v25 = vpop.f32.mrf.mxu2  ;;  %v798_v4 = vpop.f32.mrf.mxu3  ;;  %v1040_v47 = vadd.f32 %v1039_v60, %v1038_v43 }
 0x17c   :  { %v1055_v5 = vrot.slane %v1054_v45, 4  ;;  %v1064_v20 = vrot.slane %v1063_v52, 4  ;;  %v714_v53 = vpop.f32.mrf.mxu0  ;;  %v743_v6 = vpop.f32.mrf.mxu1  ;;  %v770_v41 = vadd.f32 %v769_v25, %v1792_v18  ;;  %v799_v42 = vadd.f32 %v798_v4, %v1792_v18 }
 0x17d   :  { %v1050_v48 = vrot.slane %v1049_v49, 1  ;;  %v1041_v15 = vrot.slane %v1040_v47, 1  ;;  %v715_v37 = vadd.f32 %v714_v53, %v1794_v19  ;;  %v744_v51 = vadd.f32 %v743_v6, %v1794_v19 }
 0x17e   :  { %v1056_v50 = vadd.f32 %v1055_v5, %v1054_v45  ;;  %v1065_v10 = vadd.f32 %v1064_v20, %v1063_v52 }
 0x17f   :  { %v1051_v11 = vadd.f32 %v1050_v48, %v1049_v49  ;;  %v1042_v9 = vadd.f32 %v1041_v15, %v1040_v47  ;;  %v838_v29 = vmax.f32 %v715_v37, 0.0  ;;  %v839_v33 = vmax.f32 %v744_v51, 0.0 }
 0x180   :  { %v1057_v13 = vrot.slane %v1056_v50, 2  ;;  %v1066_v14 = vrot.slane %v1065_v10, 2 }
 0x181   :  { %v1122_v39 = vadd.f32 %v1846_v36, %v1051_v11  ;;  %v1121_v40 = vadd.f32 %v1846_v36, %v1042_v9  ;;  %v926_v60 = vmul.f32 %v1813_v62, %v838_v29  ;;  %v927_v44 = vmul.f32 %v1813_v62, %v839_v33 }
 0x182   :  { %v1058_v27 = vadd.f32 %v1057_v13, %v1056_v50  ;;  %v1067_v16 = vadd.f32 %v1066_v14, %v1065_v10  ;;  %v824_v50 = vmax.f32 %v770_v41, 0.0  ;;  %v825_v10 = vmax.f32 %v799_v42, 0.0 }
 0x183   :  { %v772_v38 = vpop.f32.mrf.mxu2  ;;  %v801_v17 = vpop.f32.mrf.mxu3  ;;  %v1152_v55 = vrot.slane %v1122_v39, 7  ;;  %v1070_v14 = vadd.f32 %v926_v60, %v910_v1  ;;  %v1079_v12 = vadd.f32 %v927_v44, %v911_v26 }
 0x184   :  { %v1059_v28 = vrot.slane %v1058_v27, 1  ;;  %v1068_v3 = vrot.slane %v1067_v16, 1  ;;  %v717_v46 = vpop.f32.mrf.mxu0  ;;  %v746_v8 = vpop.f32.mrf.mxu1  ;;  %v773_v59 = vadd.f32 %v772_v38, %v1794_v19  ;;  %v802_v61 = vadd.f32 %v801_v17, %v1794_v19 }
 0x185   :  { %v718_v21 = vadd.f32 %v717_v46, %v1796_v24  ;;  %v747_v30 = vadd.f32 %v746_v8, %v1796_v24  ;;  %v1173_v49 = vsel %vm1159_vm2, %v1121_v40, %v1152_v55 }
 0x186   :  { %v1060_v22 = vadd.f32 %v1059_v28, %v1058_v27  ;;  %v1069_v23 = vadd.f32 %v1068_v3, %v1067_v16  ;;  %v840_v11 = vmax.f32 %v773_v59, 0.0  ;;  %v841_v13 = vmax.f32 %v802_v61, 0.0 }
 0x187   :  { %v854_v34 = vmax.f32 %v718_v21, 0.0  ;;  %v855_v43 = vmax.f32 %v747_v30, 0.0  ;;  %v912_v28 = vmul.f32 %v1800_v32, %v824_v50  ;;  %v913_v3 = vmul.f32 %v1800_v32, %v825_v10 }
 0x188   :  { %v1123_v7 = vadd.f32 %v1846_v36, %v1060_v22  ;;  %v1124_v35 = vadd.f32 %v1846_v36, %v1069_v23  ;;  %v928_v38 = vmul.f32 %v1813_v62, %v840_v11  ;;  %v929_v17 = vmul.f32 %v1813_v62, %v841_v13 }
 0x189   :  { %v942_v25 = vmul.f32 %v1818_v63, %v854_v34  ;;  %v943_v53 = vmul.f32 %v1818_v63, %v855_v43 }
 0x18a   :  { %v1153_v54 = vrot.slane %v1123_v7, 6  ;;  %v1154_v58 = vrot.slane %v1124_v35, 5  ;;  %v1088_v29 = vadd.f32 %v928_v38, %v912_v28  ;;  %v1097_v62 = vadd.f32 %v929_v17, %v913_v3 }
 0x18b   :  { %v775_v45 = vpop.f32.mrf.mxu2  ;;  %v804_v52 = vpop.f32.mrf.mxu3  ;;  %v1071_v39 = vadd.f32 %v1070_v14, %v942_v25  ;;  %v1080_v57 = vadd.f32 %v1079_v12, %v943_v53 }
 0x18c   :  { %v776_v18 = vadd.f32 %v775_v45, %v1796_v24  ;;  %v805_v4 = vadd.f32 %v804_v52, %v1796_v24  ;;  %v720_v5 = vpop.f32.mrf.mxu0  ;;  %v749_v20 = vpop.f32.mrf.mxu1  ;;  %v1174_v19 = vsel %vm1161_vm1, %v1153_v54, %v1154_v58 }
 0x18d   :  { %v721_v6 = vadd.f32 %v720_v5, %v1798_v31  ;;  %v750_v47 = vadd.f32 %v749_v20, %v1798_v31  ;;  %v1948_v48 = vsel %vm1163_vm3, %v1173_v49, %v1174_v19 }
 0x18e   :  { %v856_v27 = vmax.f32 %v776_v18, 0.0  ;;  %v857_v16 = vmax.f32 %v805_v4, 0.0 }
 0x18f   :  { %v870_v24 = vmax.f32 %v721_v6, 0.0  ;;  %v871_v15 = vmax.f32 %v750_v47, 0.0 }
 0x190   :  { %v944_v21 = vmul.f32 %v1818_v63, %v856_v27  ;;  %v945_v30 = vmul.f32 %v1818_v63, %v857_v16 }
 0x191   :  { %v958_v37 = vmul.f32 %v1820_v0, %v870_v24  ;;  %v959_v51 = vmul.f32 %v1820_v0, %v871_v15 }
 0x192   :  { %v1089_v1 = vadd.f32 %v1088_v29, %v944_v21  ;;  %v1098_v34 = vadd.f32 %v1097_v62, %v945_v30 }
 0x193   :  { %v1072_v2 = vadd.f32 %v1071_v39, %v958_v37  ;;  %v1081_v46 = vadd.f32 %v1080_v57, %v959_v51  ;;  %v778_v8 = vpop.f32.mrf.mxu2  ;;  %v807_v9 = vpop.f32.mrf.mxu3 }
 0x194   :  { %v779_v22 = vadd.f32 %v778_v8, %v1798_v31  ;;  %v808_v23 = vadd.f32 %v807_v9, %v1798_v31 }
 0x195   :  { %v1073_v55 = vrot.slane %v1072_v2, 4  ;;  %v1082_v56 = vrot.slane %v1081_v46, 4 }
 0x196   :  { %v872_v33 = vmax.f32 %v779_v22, 0.0  ;;  %v873_v7 = vmax.f32 %v808_v23, 0.0 }
 0x197   :  { %v1074_v35 = vadd.f32 %v1073_v55, %v1072_v2  ;;  %v1083_v32 = vadd.f32 %v1082_v56, %v1081_v46 }
 0x198   :  { %v960_v40 = vmul.f32 %v1820_v0, %v872_v33  ;;  %v961_v41 = vmul.f32 %v1820_v0, %v873_v7 }
 0x199   :  { %v1075_v42 = vrot.slane %v1074_v35, 2  ;;  %v1084_v63 = vrot.slane %v1083_v32, 2 }
 0x19a   :  { %v1090_v43 = vadd.f32 %v1089_v1, %v960_v40  ;;  %v1099_v54 = vadd.f32 %v1098_v34, %v961_v41 }
 0x19b   :  { %v1076_v58 = vadd.f32 %v1075_v42, %v1074_v35  ;;  %v1085_v31 = vadd.f32 %v1084_v63, %v1083_v32 }
 0x19c   :  { %v1091_v59 = vrot.slane %v1090_v43, 4  ;;  %v1100_v61 = vrot.slane %v1099_v54, 4 }
 0x19d   :  { %v1077_v26 = vrot.slane %v1076_v58, 1  ;;  %v1086_v60 = vrot.slane %v1085_v31, 1 }
 0x19e   :  { %v1092_v44 = vadd.f32 %v1091_v59, %v1090_v43  ;;  %v1101_v45 = vadd.f32 %v1100_v61, %v1099_v54 }
 0x19f   :  { %v1078_v52 = vadd.f32 %v1077_v26, %v1076_v58  ;;  %v1087_v49 = vadd.f32 %v1086_v60, %v1085_v31 }
 0x1a0   :  { %v1093_v25 = vrot.slane %v1092_v44, 2  ;;  %v1102_v18 = vrot.slane %v1101_v45, 2 }
 0x1a1   :  { %v1125_v0 = vadd.f32 %v1846_v36, %v1078_v52  ;;  %v1126_v20 = vadd.f32 %v1846_v36, %v1087_v49 }
 0x1a2   :  { %v1094_v4 = vadd.f32 %v1093_v25, %v1092_v44  ;;  %v1103_v5 = vadd.f32 %v1102_v18, %v1101_v45 }
 0x1a3   :  { %v1155_v50 = vrot.slane %v1125_v0, 4  ;;  %v1156_v10 = vrot.slane %v1126_v20, 3 }
 0x1a4   :  { %v1095_v19 = vrot.slane %v1094_v4, 1  ;;  %v1104_v53 = vrot.slane %v1103_v5, 1 }
 0x1a5   :  { %v1176_v24 = vsel %vm1165_vm4, %v1155_v50, %v1156_v10 }
 0x1a6   :  { %v1096_v6 = vadd.f32 %v1095_v19, %v1094_v4  ;;  %v1105_v47 = vadd.f32 %v1104_v53, %v1103_v5 }
 0x1a8   :  { %v1127_v11 = vadd.f32 %v1846_v36, %v1096_v6  ;;  %v1128_v13 = vadd.f32 %v1846_v36, %v1105_v47 }
 0x1aa   :  { %v1157_v14 = vrot.slane %v1127_v11, 2  ;;  %v1158_v12 = vrot.slane %v1128_v13, 1 }
 0x1ac   :  { %v1177_v15 = vsel %vm1167_vm5, %v1157_v14, %v1158_v12 }
 0x1ad   :  { %v1178_v27 = vsel %vm1169_vm6, %v1176_v24, %v1177_v15 }
 0x1ae   :  { %v1179_v16 = vsel %vm1171_vm7, %v1948_v48, %v1178_v27 }
 0x1af   :  { %1183 = vst [vmem:[#allocation3 + $0x8] sm:$0xff] %v1179_v16 }
 0x1b0   :  { %1194 = dma.vmem_to_hbm [thread:$0]  %s1190_s17, 256, %s1192_s20, [#allocation4]  }
 0x1b1   :  { %1293 = dma.done.wait [#allocation4], 256  }
 0x1b2   :  { %1294 = vsyncadd [#allocation4], 4294967040 }
 0x1b3   :  { %1199 = vsyncpa [#allocation4], 1 }

</bundles_post_ra>
